<compile_context>
chip_gen: v7x
topology: tpu7x:2x2x1
jax: 0.10.0
libtpu: 0.0.40
codegen_flags: <defaults>
</compile_context>

<pallas_src>
import functools
import math

import jax
import jax.numpy as jnp
from jax.experimental import pallas as pl
from jax.experimental.pallas import tpu as pltpu


def _round_up(v, m):
    return ((v + m - 1) // m) * m


# ----------------------------------------------------------------------------
# Pallas kernel: fused windowed real-DFT + masked per-tile loss partial sums
# ----------------------------------------------------------------------------
def _stft_sums_kernel(xf_ref, yf_ref, w_ref, out_ref, *, m_valid, n_freq, tm, fpad):
    # xf_ref, yf_ref : (tm, fft)       bf16 frame tiles (predicted / target)
    # w_ref          : (fft, 2*fpad)   bf16 windowed [cos | -sin] DFT basis (resident)
    # out_ref        : (1, 8, 128)     f32 per-tile partial sums (rows 0..3, lane 0)
    i = pl.program_id(0)

    w = w_ref[...]
    rx = jnp.dot(xf_ref[...], w, preferred_element_type=jnp.float32)   # (tm, 2*fpad)
    ry = jnp.dot(yf_ref[...], w, preferred_element_type=jnp.float32)

    # Lane-aligned slices (fpad is a multiple of 128).
    x_re, x_im = rx[:, :fpad], rx[:, fpad:]
    y_re, y_im = ry[:, :fpad], ry[:, fpad:]

    # Mask out padded frames (rows >= m_valid) and padded frequency bins.
    row = jax.lax.broadcasted_iota(jnp.int32, (tm, fpad), 0) + i * tm
    col = jax.lax.broadcasted_iota(jnp.int32, (tm, fpad), 1)
    mask = ((row < m_valid) & (col < n_freq)).astype(jnp.float32)

    x_pow = jnp.maximum(x_re * x_re + x_im * x_im, 1e-7)
    y_pow = jnp.maximum(y_re * y_re + y_im * y_im, 1e-7)
    x_mag = jnp.sqrt(x_pow)
    y_mag = jnp.sqrt(y_pow)
    diff = y_mag - x_mag

    d_re = y_re - x_re
    d_im = y_im - x_im
    err_pow = jnp.maximum(d_re * d_re + d_im * d_im, 1e-7)

    # log(sqrt(p)) = 0.5*log(p); |log y_mag - log x_mag| = 0.5*|log y_pow - log x_pow|
    s_clx = jnp.sum(mask * (0.5 * jnp.log(err_pow)))                 # complex STFT loss sum
    s_num = jnp.sum(mask * (diff * diff))                            # ||y_mag - x_mag||_F^2
    s_den = jnp.sum(mask * y_pow)                                    # ||y_mag||_F^2
    s_mag = jnp.sum(mask * (0.5 * jnp.abs(jnp.log(y_pow) - jnp.log(x_pow))))

    ridx = jax.lax.broadcasted_iota(jnp.int32, (8, 128), 0)
    blk = jnp.where(ridx == 0, s_clx, 0.0)
    blk = jnp.where(ridx == 1, s_num, blk)
    blk = jnp.where(ridx == 2, s_den, blk)
    blk = jnp.where(ridx == 3, s_mag, blk)
    out_ref[0] = blk


def _stft_partial_sums(x_frames, y_frames, basis, *, m_valid, n_freq, tm):
    m_pad, fft = x_frames.shape
    fpad = basis.shape[1] // 2
    num_tiles = m_pad // tm

    kernel = functools.partial(_stft_sums_kernel, m_valid=m_valid,
                               n_freq=n_freq, tm=tm, fpad=fpad)

    flops = 2 * (2 * m_pad * fft * (2 * fpad))            # two bf16 matmuls per call
    transcendentals = 5 * m_pad * fpad                    # logs + sqrts
    bytes_accessed = (2 * m_pad * fft * 2                 # bf16 frame tiles
                      + fft * 2 * fpad * 2                # resident basis
                      + num_tiles * 8 * 128 * 4)          # per-tile partial sums

    grid_spec = pltpu.PrefetchScalarGridSpec(
        num_scalar_prefetch=0,
        grid=(num_tiles,),
        in_specs=[
            pl.BlockSpec((tm, fft), lambda i: (i, 0)),
            pl.BlockSpec((tm, fft), lambda i: (i, 0)),
            pl.BlockSpec((fft, 2 * fpad), lambda i: (0, 0)),   # basis stays resident
        ],
        out_specs=pl.BlockSpec((1, 8, 128), lambda i: (i, 0, 0)),
    )

    partials = pl.pallas_call(
        kernel,
        out_shape=jax.ShapeDtypeStruct((num_tiles, 8, 128), jnp.float32),
        grid_spec=grid_spec,
        compiler_params=pltpu.CompilerParams(
            dimension_semantics=("parallel",),        # shard tiles across TCs (v7x)
            vmem_limit_bytes=48 * 1024 * 1024,        # fits v5e/v6e/v7x budgets at tm<=256
        ),
        cost_estimate=pl.CostEstimate(
            flops=flops, transcendentals=transcendentals, bytes_accessed=bytes_accessed),
    )(x_frames, y_frames, basis)

    # (4,) totals: [complex-loss sum, ||y-x||^2, ||y||^2, sum|log y - log x|]
    return jnp.sum(partials[:, :4, 0], axis=0)


# ----------------------------------------------------------------------------
# Glue: torch.stft-style framing (center=True, reflect pad) + per-resolution state
# ----------------------------------------------------------------------------
def _hann_window(win_length):
    # torch.hann_window default (periodic=True)
    n = jnp.arange(win_length, dtype=jnp.float32)
    return 0.5 - 0.5 * jnp.cos(2.0 * math.pi * n / win_length)


def _make_frames(x, fft_size, hop_size):
    # x: (B, T) -> (B * n_frames, fft_size) bf16, matching torch.stft center=True.
    B, T = x.shape
    pad = fft_size // 2
    xp = jnp.pad(x, ((0, 0), (pad, pad)), mode="reflect").astype(jnp.bfloat16)
    n_frames = 1 + T // hop_size
    idx = jnp.arange(n_frames)[:, None] * hop_size + jnp.arange(fft_size)[None, :]
    frames = xp[:, idx]                                    # (B, n_frames, fft)
    return frames.reshape(B * n_frames, fft_size), B * n_frames


class _STFTResolution:
    """Per-resolution state: fused windowed DFT basis + tiled Pallas reduction."""

    def __init__(self, fft_size, shift_size, win_length, tile_m=256):
        self.fft_size = fft_size
        self.shift_size = shift_size
        self.win_length = win_length
        self.n_freq = fft_size // 2 + 1
        self.fpad = _round_up(self.n_freq, 128)            # lane-aligned re/im halves
        self.tile_m = tile_m

        # Phase-accurate basis: reduce k*f mod fft_size in integer arithmetic before
        # multiplying by 2*pi/fft_size (f32 k*f at fft=1024+ loses phase accuracy).
        k = jnp.arange(fft_size, dtype=jnp.int32)[:, None]
        f = jnp.arange(self.n_freq, dtype=jnp.int32)[None, :]
        ang = (2.0 * math.pi / fft_size) * ((k * f) % fft_size).astype(jnp.float32)

        # Fold the (zero-padded, centered) Hann window into the basis.
        win = _hann_window(win_length)
        lpad = (fft_size - win_length) // 2
        wfull = jnp.pad(win, (lpad, fft_size - win_length - lpad))[:, None]
        cos_b = jnp.cos(ang) * wfull
        sin_b = -jnp.sin(ang) * wfull
        pad_c = self.fpad - self.n_freq
        cos_b = jnp.pad(cos_b, ((0, 0), (0, pad_c)))
        sin_b = jnp.pad(sin_b, ((0, 0), (0, pad_c)))
        self.basis = jnp.concatenate([cos_b, sin_b], axis=1).astype(jnp.bfloat16)

    def sums(self, x, y):
        # TODO(synk): framing is still an XLA gather in glue; an in-kernel manual-DMA
        # framer (contiguous chunk per frame tile) would remove the ~fft/hop x HBM
        # read amplification flagged for v6e.
        xf, m = _make_frames(x, self.fft_size, self.shift_size)
        yf, _ = _make_frames(y, self.fft_size, self.shift_size)
        tm = min(self.tile_m, _round_up(m, 8))
        m_pad = _round_up(m, tm)
        if m_pad != m:
            xf = jnp.pad(xf, ((0, m_pad - m), (0, 0)))
            yf = jnp.pad(yf, ((0, m_pad - m), (0, 0)))
        totals = _stft_partial_sums(xf, yf, self.basis,
                                    m_valid=m, n_freq=self.n_freq, tm=tm)
        return totals, m * self.n_freq


# ----------------------------------------------------------------------------
# Loss modules mirroring the PyTorch spec
# ----------------------------------------------------------------------------
class STFTLossPallas:
    """STFT loss: (spectral convergence, log-magnitude L1)."""

    def __init__(self, fft_size=1024, shift_size=120, win_length=600,
                 window="hann_window", sampling_rate=22050, a_weighting=False):
        assert window == "hann_window"
        # a_weighting collapses to weights = 1.0 in the reference implementation.
        self.res = _STFTResolution(fft_size, shift_size, win_length)

    def __call__(self, x, y, lens=None):
        # TODO(synk): masked / per-utterance (lens / len_ratios) variant not implemented.
        assert lens is None
        s, count = self.res.sums(x, y)
        sc_loss = jnp.sqrt(s[1]) / jnp.sqrt(s[2])
        mag_loss = s[3] / count
        return sc_loss, mag_loss


class ComplexSTFTLossPallas:
    """Complex STFT loss: sum(log(sqrt(clamp(|Y - Y_hat|^2, 1e-7))))."""

    def __init__(self, fft_size=1024, shift_size=120, win_length=600,
                 window="hann_window", sampling_rate=22050, a_weighting=False):
        assert window == "hann_window"
        self.res = _STFTResolution(fft_size, shift_size, win_length)

    def __call__(self, x, y):
        s, _ = self.res.sums(x, y)
        return s[0]


class MultiResolutionSTFTLossPallas:
    def __init__(self, fft_sizes=(1024, 2048, 512), hop_sizes=(120, 240, 50),
                 win_lengths=(600, 1200, 240), window="hann_window",
                 sampling_rate=22050, a_weighting=False):
        assert len(fft_sizes) == len(hop_sizes) == len(win_lengths)
        self.stft_losses = [STFTLossPallas(fs, ss, wl, window, sampling_rate, a_weighting)
                            for fs, ss, wl in zip(fft_sizes, hop_sizes, win_lengths)]

    def __call__(self, x, y, lens=None):
        if x.ndim == 3:
            x = x.reshape(-1, x.shape[-1])
            y = y.reshape(-1, y.shape[-1])
        sc_loss, mag_loss = 0.0, 0.0
        for f in self.stft_losses:
            sc_l, mag_l = f(x, y, lens)
            sc_loss += sc_l
            mag_loss += mag_l
        n = len(self.stft_losses)
        return sc_loss / n, mag_loss / n


class MultiResolutionComplexSTFTLossPallas:
    """Multi-resolution complex STFT loss (the spec's target module)."""

    def __init__(self, fft_sizes=(1024, 2048, 512), hop_sizes=(120, 240, 50),
                 win_lengths=(600, 1200, 240), window="hann_window",
                 sampling_rate=22050, a_weighting=False):
        assert len(fft_sizes) == len(hop_sizes) == len(win_lengths)
        self.stft_losses = [ComplexSTFTLossPallas(fs, ss, wl, window, sampling_rate,
                                                  a_weighting)
                            for fs, ss, wl in zip(fft_sizes, hop_sizes, win_lengths)]

    def __call__(self, x, y):
        if x.ndim == 3:
            x = x.reshape(-1, x.shape[-1])
            y = y.reshape(-1, y.shape[-1])
        total = 0.0
        for f in self.stft_losses:
            total += f(x, y)
        return total / len(self.stft_losses)


# ----------------------------------------------------------------------------
# Pure-JAX reference (same numerics: bf16 frames/basis, f32 accumulation)
# ----------------------------------------------------------------------------
def _reference_losses(res, x, y):
    xf, _ = _make_frames(x, res.fft_size, res.shift_size)
    yf, _ = _make_frames(y, res.fft_size, res.shift_size)
    rx = jnp.dot(xf, res.basis, preferred_element_type=jnp.float32)
    ry = jnp.dot(yf, res.basis, preferred_element_type=jnp.float32)
    nf, fp = res.n_freq, res.fpad
    x_re, x_im = rx[:, :nf], rx[:, fp:fp + nf]
    y_re, y_im = ry[:, :nf], ry[:, fp:fp + nf]
    x_pow = jnp.maximum(x_re ** 2 + x_im ** 2, 1e-7)
    y_pow = jnp.maximum(y_re ** 2 + y_im ** 2, 1e-7)
    x_mag, y_mag = jnp.sqrt(x_pow), jnp.sqrt(y_pow)
    err_pow = jnp.maximum((y_re - x_re) ** 2 + (y_im - x_im) ** 2, 1e-7)
    clx = jnp.sum(0.5 * jnp.log(err_pow))
    sc = jnp.linalg.norm(y_mag - x_mag) / jnp.linalg.norm(y_mag)
    mag = jnp.mean(jnp.abs(jnp.log(y_mag) - jnp.log(x_mag)))
    return clx, sc, mag


if __name__ == "__main__":
    # Small shapes consistent with the module's (B, T) signal inputs.
    B, T = 2, 256
    fft_sizes, hop_sizes, win_lengths = [64, 128, 32], [16, 32, 8], [32, 64, 16]

    key = jax.random.PRNGKey(0)
    kx, ky = jax.random.split(key)
    x = jax.random.normal(kx, (B, T), dtype=jnp.float32)
    y = jax.random.normal(ky, (B, T), dtype=jnp.float32)

    mr_complex = MultiResolutionComplexSTFTLossPallas(fft_sizes, hop_sizes, win_lengths)
    mr_stft = MultiResolutionSTFTLossPallas(fft_sizes, hop_sizes, win_lengths)

    complex_loss = jax.block_until_ready(mr_complex(x, y))
    sc_loss, mag_loss = jax.block_until_ready(mr_stft(x, y, None))

    # Correctness spot check against a plain-JAX reference with matched precision.
    ref_clx = ref_sc = ref_mag = 0.0
    for loss_mod in mr_complex.stft_losses:
        c, s, m = _reference_losses(loss_mod.res, x, y)
        ref_clx += c
        ref_sc += s
        ref_mag += m
    n_res = len(mr_complex.stft_losses)
    ref_clx, ref_sc, ref_mag = ref_clx / n_res, ref_sc / n_res, ref_mag / n_res

    assert jnp.allclose(complex_loss, ref_clx, rtol=1e-2, atol=1e-2), (complex_loss, ref_clx)
    assert jnp.allclose(sc_loss, ref_sc, rtol=1e-2, atol=1e-2), (sc_loss, ref_sc)
    assert jnp.allclose(mag_loss, ref_mag, rtol=1e-2, atol=1e-2), (mag_loss, ref_mag)

    print("KERNEL_OK")
</pallas_src>

<mosaic_0001>
module attributes {stable_mosaic.version = 11 : i64} {
  func.func @_stft_sums_kernel(%arg0: i32, %arg1: memref<40x64xbf16, #tpu.memory_space<vmem>>, %arg2: memref<40x64xbf16, #tpu.memory_space<vmem>>, %arg3: memref<64x256xbf16, #tpu.memory_space<vmem>>, %arg4: memref<1x8x128xf32, #tpu.memory_space<vmem>>) attributes {dimension_semantics = [#tpu.dimension_semantics<parallel>], iteration_bounds = array<i64: 1>, scalar_prefetch = 0 : i64, scratch_operands = 0 : i64, tpu.core_type = #tpu.core_type<tc>, window_params = [{transform_indices = @transform_0, window_bounds = array<i64: 40, 64>}, {transform_indices = @transform_1, window_bounds = array<i64: 40, 64>}, {pipeline_mode = #tpu.pipeline_mode<synchronous>, transform_indices = @transform_2, window_bounds = array<i64: 64, 256>}, {transform_indices = @transform_3, window_bounds = array<i64: 1, 8, 128>}]} {
    %c0 = arith.constant 0 : index
    %c0_0 = arith.constant 0 : index
    %0 = vector.load %arg3[%c0, %c0_0] : memref<64x256xbf16, #tpu.memory_space<vmem>>, vector<64x256xbf16>
    %c0_1 = arith.constant 0 : index
    %c0_2 = arith.constant 0 : index
    %1 = vector.load %arg1[%c0_1, %c0_2] : memref<40x64xbf16, #tpu.memory_space<vmem>>, vector<40x64xbf16>
    %cst = arith.constant dense<0.000000e+00> : vector<40x256xf32>
    %2 = tpu.matmul %1, %0, %cst {dimension_numbers = #tpu.dot_dimension_numbers<[1], [0], [0], [1], [0, 0, 1, 1], [], []>} : vector<40x64xbf16>, vector<64x256xbf16>, vector<40x256xf32> -> vector<40x256xf32>
    %c0_3 = arith.constant 0 : index
    %c0_4 = arith.constant 0 : index
    %3 = vector.load %arg2[%c0_3, %c0_4] : memref<40x64xbf16, #tpu.memory_space<vmem>>, vector<40x64xbf16>
    %cst_5 = arith.constant dense<0.000000e+00> : vector<40x256xf32>
    %4 = tpu.matmul %3, %0, %cst_5 {dimension_numbers = #tpu.dot_dimension_numbers<[1], [0], [0], [1], [0, 0, 1, 1], [], []>} : vector<40x64xbf16>, vector<64x256xbf16>, vector<40x256xf32> -> vector<40x256xf32>
    %5 = vector.extract_strided_slice %2 {offsets = [0, 0], sizes = [40, 128], strides = [1, 1]} : vector<40x256xf32> to vector<40x128xf32>
    %6 = vector.extract_strided_slice %2 {offsets = [0, 128], sizes = [40, 128], strides = [1, 1]} : vector<40x256xf32> to vector<40x128xf32>
    %7 = vector.extract_strided_slice %4 {offsets = [0, 0], sizes = [40, 128], strides = [1, 1]} : vector<40x256xf32> to vector<40x128xf32>
    %8 = vector.extract_strided_slice %4 {offsets = [0, 128], sizes = [40, 128], strides = [1, 1]} : vector<40x256xf32> to vector<40x128xf32>
    %9 = tpu.iota {dimensions = array<i32: 0>} : vector<40x128xi32>
    %c40_i32 = arith.constant 40 : i32
    %10 = arith.muli %arg0, %c40_i32 : i32
    %11 = vector.broadcast %10 : i32 to vector<40x128xi32>
    %12 = arith.addi %9, %11 : vector<40x128xi32>
    %13 = tpu.iota {dimensions = array<i32: 1>} : vector<40x128xi32>
    %c34_i32 = arith.constant 34 : i32
    %14 = vector.broadcast %c34_i32 : i32 to vector<40x128xi32>
    %15 = arith.cmpi slt, %12, %14 : vector<40x128xi32>
    %c33_i32 = arith.constant 33 : i32
    %16 = vector.broadcast %c33_i32 : i32 to vector<40x128xi32>
    %17 = arith.cmpi slt, %13, %16 : vector<40x128xi32>
    %18 = arith.andi %15, %17 : vector<40x128xi1>
    %19 = arith.extui %18 : vector<40x128xi1> to vector<40x128xi32>
    %20 = arith.sitofp %19 : vector<40x128xi32> to vector<40x128xf32>
    %21 = arith.mulf %5, %5 : vector<40x128xf32>
    %22 = arith.mulf %6, %6 : vector<40x128xf32>
    %23 = arith.addf %21, %22 : vector<40x128xf32>
    %cst_6 = arith.constant 1.000000e-07 : f32
    %24 = vector.broadcast %cst_6 : f32 to vector<40x128xf32>
    %25 = arith.maximumf %23, %24 : vector<40x128xf32>
    %26 = arith.mulf %7, %7 : vector<40x128xf32>
    %27 = arith.mulf %8, %8 : vector<40x128xf32>
    %28 = arith.addf %26, %27 : vector<40x128xf32>
    %cst_7 = arith.constant 1.000000e-07 : f32
    %29 = vector.broadcast %cst_7 : f32 to vector<40x128xf32>
    %30 = arith.maximumf %28, %29 : vector<40x128xf32>
    %31 = math.sqrt %25 : vector<40x128xf32>
    %32 = math.sqrt %30 : vector<40x128xf32>
    %33 = arith.subf %32, %31 : vector<40x128xf32>
    %34 = arith.subf %7, %5 : vector<40x128xf32>
    %35 = arith.subf %8, %6 : vector<40x128xf32>
    %36 = arith.mulf %34, %34 : vector<40x128xf32>
    %37 = arith.mulf %35, %35 : vector<40x128xf32>
    %38 = arith.addf %36, %37 : vector<40x128xf32>
    %cst_8 = arith.constant 1.000000e-07 : f32
    %39 = vector.broadcast %cst_8 : f32 to vector<40x128xf32>
    %40 = arith.maximumf %38, %39 : vector<40x128xf32>
    %41 = math.log %40 : vector<40x128xf32>
    %cst_9 = arith.constant 5.000000e-01 : f32
    %42 = vector.broadcast %cst_9 : f32 to vector<40x128xf32>
    %43 = arith.mulf %42, %41 : vector<40x128xf32>
    %44 = arith.mulf %20, %43 : vector<40x128xf32>
    %45 = vector.shape_cast %44 : vector<40x128xf32> to vector<1x40x128xf32>
    %cst_10 = arith.constant dense<0.000000e+00> : vector<1xf32>
    %46 = vector.multi_reduction <add>, %45, %cst_10 [1, 2] : vector<1x40x128xf32> to vector<1xf32>
    %47 = vector.shape_cast %46 : vector<1xf32> to vector<1x1x1xf32>
    %48 = vector.extract %47[0, 0, 0] : f32 from vector<1x1x1xf32>
    %49 = arith.mulf %33, %33 : vector<40x128xf32>
    %50 = arith.mulf %20, %49 : vector<40x128xf32>
    %51 = vector.shape_cast %50 : vector<40x128xf32> to vector<1x40x128xf32>
    %cst_11 = arith.constant dense<0.000000e+00> : vector<1xf32>
    %52 = vector.multi_reduction <add>, %51, %cst_11 [1, 2] : vector<1x40x128xf32> to vector<1xf32>
    %53 = vector.shape_cast %52 : vector<1xf32> to vector<1x1x1xf32>
    %54 = vector.extract %53[0, 0, 0] : f32 from vector<1x1x1xf32>
    %55 = arith.mulf %20, %30 : vector<40x128xf32>
    %56 = vector.shape_cast %55 : vector<40x128xf32> to vector<1x40x128xf32>
    %cst_12 = arith.constant dense<0.000000e+00> : vector<1xf32>
    %57 = vector.multi_reduction <add>, %56, %cst_12 [1, 2] : vector<1x40x128xf32> to vector<1xf32>
    %58 = vector.shape_cast %57 : vector<1xf32> to vector<1x1x1xf32>
    %59 = vector.extract %58[0, 0, 0] : f32 from vector<1x1x1xf32>
    %60 = math.log %30 : vector<40x128xf32>
    %61 = math.log %25 : vector<40x128xf32>
    %62 = arith.subf %60, %61 : vector<40x128xf32>
    %63 = math.absf %62 : vector<40x128xf32>
    %cst_13 = arith.constant 5.000000e-01 : f32
    %64 = vector.broadcast %cst_13 : f32 to vector<40x128xf32>
    %65 = arith.mulf %64, %63 : vector<40x128xf32>
    %66 = arith.mulf %20, %65 : vector<40x128xf32>
    %67 = vector.shape_cast %66 : vector<40x128xf32> to vector<1x40x128xf32>
    %cst_14 = arith.constant dense<0.000000e+00> : vector<1xf32>
    %68 = vector.multi_reduction <add>, %67, %cst_14 [1, 2] : vector<1x40x128xf32> to vector<1xf32>
    %69 = vector.shape_cast %68 : vector<1xf32> to vector<1x1x1xf32>
    %70 = vector.extract %69[0, 0, 0] : f32 from vector<1x1x1xf32>
    %71 = tpu.iota {dimensions = array<i32: 0>} : vector<8x128xi32>
    %c0_i32 = arith.constant 0 : i32
    %72 = vector.broadcast %c0_i32 : i32 to vector<8x128xi32>
    %73 = arith.cmpi eq, %71, %72 : vector<8x128xi32>
    %cst_15 = arith.constant 0.000000e+00 : f32
    %74 = vector.broadcast %48 : f32 to vector<8x128xf32>
    %75 = vector.broadcast %cst_15 : f32 to vector<8x128xf32>
    %76 = arith.select %73, %74, %75 : vector<8x128xi1>, vector<8x128xf32>
    %c1_i32 = arith.constant 1 : i32
    %77 = vector.broadcast %c1_i32 : i32 to vector<8x128xi32>
    %78 = arith.cmpi eq, %71, %77 : vector<8x128xi32>
    %79 = vector.broadcast %54 : f32 to vector<8x128xf32>
    %80 = arith.select %78, %79, %76 : vector<8x128xi1>, vector<8x128xf32>
    %c2_i32 = arith.constant 2 : i32
    %81 = vector.broadcast %c2_i32 : i32 to vector<8x128xi32>
    %82 = arith.cmpi eq, %71, %81 : vector<8x128xi32>
    %83 = vector.broadcast %59 : f32 to vector<8x128xf32>
    %84 = arith.select %82, %83, %80 : vector<8x128xi1>, vector<8x128xf32>
    %c3_i32 = arith.constant 3 : i32
    %85 = vector.broadcast %c3_i32 : i32 to vector<8x128xi32>
    %86 = arith.cmpi eq, %71, %85 : vector<8x128xi32>
    %87 = vector.broadcast %70 : f32 to vector<8x128xf32>
    %88 = arith.select %86, %87, %84 : vector<8x128xi1>, vector<8x128xf32>
    %c0_16 = arith.constant 0 : index
    %c0_17 = arith.constant 0 : index
    %c0_18 = arith.constant 0 : index
    %89 = vector.load %arg4[%c0_16, %c0_17, %c0_18] : memref<1x8x128xf32, #tpu.memory_space<vmem>>, vector<1x8x128xf32>
    %90 = vector.shape_cast %89 : vector<1x8x128xf32> to vector<8x128xf32>
    %91 = vector.shape_cast %88 : vector<8x128xf32> to vector<1x8x128xf32>
    tpu.vector_store %arg4[%c0_16, %c0_17, %c0_18], %91 {strides = array<i32>} : memref<1x8x128xf32, #tpu.memory_space<vmem>>, vector<1x8x128xf32>,
    return
  }
  func.func @transform_0(%arg0: i32) -> (i32, i32) {
    %c0_i32 = arith.constant 0 : i32
    %c0_i32_0 = arith.constant 0 : i32
    return %arg0, %c0_i32 : i32, i32
  }
  func.func @transform_1(%arg0: i32) -> (i32, i32) {
    %c0_i32 = arith.constant 0 : i32
    %c0_i32_0 = arith.constant 0 : i32
    return %arg0, %c0_i32 : i32, i32
  }
  func.func @transform_2(%arg0: i32) -> (i32, i32) {
    %c0_i32 = arith.constant 0 : i32
    %c0_i32_0 = arith.constant 0 : i32
    %c0_i32_1 = arith.constant 0 : i32
    return %c0_i32, %c0_i32_0 : i32, i32
  }
  func.func @transform_3(%arg0: i32) -> (i32, i32, i32) {
    %c0_i32 = arith.constant 0 : i32
    %c0_i32_0 = arith.constant 0 : i32
    %c0_i32_1 = arith.constant 0 : i32
    return %arg0, %c0_i32, %c0_i32_0 : i32, i32, i32
  }
}

</mosaic_0001>

<bundles_post_ra>
// kernel: tpu_custom_call.1
= control target key start
LH: loop header
LB: loop body
LE: loop exit
PB: predicated region body
PF: predicated region fallthrough
CT: control target
= control target key end

     0   :  { %8 = vsyncpa [#allocation3], 0  ;;  %s1100_s0 = inlined_call_operand.hbm [shape: bf16[40,64], index: 0, kind: input, shape index: {}]   ;;  %s1101_s1 = inlined_call_operand.hbm [shape: bf16[40,64], index: 1, kind: input, shape index: {}]   ;;  %s1102_s2 = inlined_call_operand.hbm [shape: bf16[64,256], index: 2, kind: input, shape index: {}]   ;;  %s1103_s3 = inlined_call_operand.hbm [shape: f32[1,8,128], index: 3, kind: output, shape index: {}]  }
   0x1   :  { %9 = vsyncpa [#allocation6], 0 }
   0x2   :  { %10 = vsyncpa [#allocation4], 0  ;;  %s824_s12 = smov [#allocation5]   ;;  %s825_s14 = smov [#allocation2]  }
   0x3   :  { %s28_s13 = sshll.u32 %s824_s12, 4  ;;  %s16_s15 = sshll.u32 %s825_s14, 4  ;;  %s29_s13 = int_to_ptr.vmem [resolvable:$true] %s28_s13  ;;  %s854_s15 = int_to_ptr.vmem [resolvable:$true] %s16_s15 }
   0x4   :  { %s730_s18 = scalar_lea.hbm %s1101_s1, 320 }
   0x5   :  { %p731_p0 = scmp.ne.s32.totalorder %s1101_s1, %s730_s18  ;;  %p734_p1 = scmp.lt.u32.totalorder %s730_s18, %s1101_s1 }
   0x7   :  { %p736_p2 = pnand %p734_p1, %p731_p0 }
   0x9   :  { %739 = shalt.err (!%p736_p2)
}
   0xa   :  { %s740_s23 = scalar_lea.vmem %s29_s13, 320  ;;  %p745_p4 = scmp.lt.s32.totalorder %s29_s13, %s29_s13 }
   0xb   :  { %p741_p3 = scmp.ne.s32.totalorder %s29_s13, %s740_s23  ;;  %p746_p5 = scmp.lt.s32.totalorder %s740_s23, %s740_s23 }
   0xd   :  { %p747_p6 = por %p746_p5, %p745_p4 }
   0xf   :  { %p748_p7 = pnand %p747_p6, %p741_p3 }
  0x11   :  { %751 = shalt.err (!%p748_p7)
}
  0x12   :  { %s826_s24 = smov 64   ;;  %s827_s25 = smov 4  }
  0x13   :  { %34 = dma.hbm_to_vmem [thread:$0]  %s1101_s1, 320, %s29_s13, [#allocation6], %s826_s24, %s826_s24, %s827_s25  }
  0x14   :  { %s752_s30 = scalar_lea.hbm %s1100_s0, 320 }
  0x15   :  { %p753_p8 = scmp.ne.s32.totalorder %s1100_s0, %s752_s30  ;;  %p756_p9 = scmp.lt.u32.totalorder %s752_s30, %s1100_s0 }
  0x17   :  { %p758_p10 = pnand %p756_p9, %p753_p8 }
  0x19   :  { %761 = shalt.err (!%p758_p10)
}
  0x1a   :  { %s762_s8 = scalar_lea.vmem %s854_s15, 320  ;;  %p767_p12 = scmp.lt.s32.totalorder %s854_s15, %s854_s15 }
  0x1b   :  { %p763_p11 = scmp.ne.s32.totalorder %s854_s15, %s762_s8  ;;  %p768_p13 = scmp.lt.s32.totalorder %s762_s8, %s762_s8 }
  0x1d   :  { %p769_p0 = por %p768_p13, %p767_p12 }
  0x1f   :  { %p770_p1 = pnand %p769_p0, %p763_p11 }
  0x21   :  { %773 = shalt.err (!%p770_p1)
}
  0x22   :  { %22 = dma.hbm_to_vmem [thread:$0]  %s1100_s0, 320, %s854_s15, [#allocation3], %s826_s24, %s826_s24, %s827_s25  }
  0x23   :  { %s828_s10 = smov [#allocation7]   ;;  %s774_s14 = scalar_lea.hbm %s1102_s2, 1024 }
  0x24   :  { %s40_s11 = sshll.u32 %s828_s10, 4  ;;  %p775_p2 = scmp.ne.s32.totalorder %s1102_s2, %s774_s14  ;;  %s41_s11 = int_to_ptr.vmem [resolvable:$true] %s40_s11 }
  0x25   :  { %p778_p3 = scmp.lt.u32.totalorder %s774_s14, %s1102_s2 }
  0x27   :  { %p780_p4 = pnand %p778_p3, %p775_p2 }
  0x29   :  { %783 = shalt.err (!%p780_p4)
}
  0x2a   :  { %s784_s20 = scalar_lea.vmem %s41_s11, 1024  ;;  %p789_p6 = scmp.lt.s32.totalorder %s41_s11, %s41_s11 }
  0x2b   :  { %p785_p5 = scmp.ne.s32.totalorder %s41_s11, %s784_s20  ;;  %p790_p7 = scmp.lt.s32.totalorder %s784_s20, %s784_s20 }
  0x2d   :  { %p791_p8 = por %p790_p7, %p789_p6 }
  0x2f   :  { %p792_p9 = pnand %p791_p8, %p785_p5 }
  0x31   :  { %795 = shalt.err (!%p792_p9)
}
  0x32   :  { %s829_s0 = smov 128   ;;  %s830_s15 = smov 8  }
  0x33   :  { %46 = dma.hbm_to_vmem [thread:$0]  %s1102_s2, 1024, %s41_s11, [#allocation6], %s829_s0, %s829_s0, %s830_s15  }
  0x34   :  { %818 = dma.done.wait [#allocation3], 320  }
  0x35   :  { %819 = vsyncadd [#allocation3], 4294966976 }
  0x36   :  { %820 = dma.done.wait [#allocation6], 1344  }
  0x37   :  { %821 = vsyncadd [#allocation6], 4294965952  ;;  %v831_v0 = vmov 0   ;;  %v662_v1 = vld [vmem:[#allocation7 + $0x4] ss:$8 sps:$4 sm:$0xff]   ;;  %v674_v9 = vld [vmem:[#allocation2] sm:$0xff]   ;;  %v282_v15 = vlaneseq }
  0x38   :  { %165 = vmatprep.mubr.bf16.mxu0 %v831_v0  ;;  %253 = vmatprep.mubr.bf16.mxu1 %v831_v0  ;;  %v664_v2 = vld [vmem:[#allocation7] ss:$8 sps:$4 sm:$0xff]   ;;  %v665_v3 = vld [vmem:[#allocation7 + $0x14] ss:$8 sps:$4 sm:$0xff]   ;;  %v667_v4 = vld [vmem:[#allocation7 + $0x10] ss:$8 sps:$4 sm:$0xff]  }
  0x39   :  { %133 = vmatprep.subr.bf16.mxu0 %v662_v1  ;;  %221 = vmatprep.subr.bf16.mxu1 %v662_v1  ;;  %v668_v5 = vld [vmem:[#allocation7 + $0x24] ss:$8 sps:$4 sm:$0xff]   ;;  %v670_v6 = vld [vmem:[#allocation7 + $0x20] ss:$8 sps:$4 sm:$0xff]   ;;  %v671_v7 = vld [vmem:[#allocation7 + $0x34] ss:$8 sps:$4 sm:$0xff]  }
  0x3a   :  { %134 = vmatpush1.bf16.msra.mxu0 %v664_v2  ;;  %222 = vmatpush1.bf16.msra.mxu1 %v664_v2  ;;  %v673_v8 = vld [vmem:[#allocation7 + $0x30] ss:$8 sps:$4 sm:$0xff]   ;;  %vm123_vm0 = vcmask 523264   ;;  %v676_v11 = vld [vmem:[#allocation2 + $0x8] sm:$0xff]   ;;  %v678_v13 = vld [vmem:[#allocation2 + $0x10] ss:$0 sps:$4 sm:$0xff]  }
  0x3b   :  { %135 = vmatprep.subr.bf16.mxu0 %v665_v3  ;;  %223 = vmatprep.subr.bf16.mxu1 %v665_v3  ;;  %v675_v10 = vld [vmem:[#allocation5] sm:$0xff]   ;;  %v677_v12 = vld [vmem:[#allocation5 + $0x8] sm:$0xff]   ;;  %v679_v14 = vld [vmem:[#allocation5 + $0x10] ss:$0 sps:$4 sm:$0xff]   ;;  %v897_v16 = vand.u32 127, %v282_v15  ;;  %v899_v17 = vshrl.u32 %v282_v15, 7 }
  0x3c   :  { %v832_v49 = vmov 0.0   ;;  %s833_s24 = smov [#allocation8]  }
  0x3d   :  { %vm302_vm1 = vcmp.lt.s32.totalorder %v897_v16, 33  ;;  %v903_v30 = vadd.s32 32, %v899_v17  ;;  %s609_s25 = sshll.u32 %s833_s24, 4  ;;  %s610_s25 = int_to_ptr.vmem [resolvable:$true] %s609_s25 }
  0x3e   :  { %136 = vmatpush1.bf16.msra.mxu0 %v667_v4  ;;  %224 = vmatpush1.bf16.msra.mxu1 %v667_v4  ;;  %v910_v50 = vsel %vm302_vm1, 1.0, %v832_v49  ;;  %s796_s28 = scalar_lea.vmem %s610_s25, 128  ;;  %p801_p11 = scmp.lt.s32.totalorder %s610_s25, %s610_s25 }
  0x3f   :  { %137 = vmatprep.subr.bf16.mxu0 %v668_v5  ;;  %225 = vmatprep.subr.bf16.mxu1 %v668_v5  ;;  %vm301_vm2 = vcmp.lt.s32.totalorder %v903_v30, 34  ;;  %p797_p10 = scmp.ne.s32.totalorder %s610_s25, %s796_s28  ;;  %p802_p12 = scmp.lt.s32.totalorder %s796_s28, %s796_s28 }
  0x40   :  { %vm307_vm3 = vmand %vm301_vm2, %vm302_vm1 }
  0x41   :  { %p803_p13 = por %p802_p12, %p801_p11 }
  0x42   :  { %138 = vmatpush1.bf16.msra.mxu0 %v670_v6  ;;  %226 = vmatpush1.bf16.msra.mxu1 %v670_v6 }
  0x43   :  { %139 = vmatprep.subr.bf16.mxu0 %v671_v7  ;;  %227 = vmatprep.subr.bf16.mxu1 %v671_v7  ;;  %p804_p0 = pnand %p803_p13, %p797_p10 }
  0x46   :  { %140 = vmatpush1.bf16.msra.mxu0 %v673_v8  ;;  %228 = vmatpush1.bf16.msra.mxu1 %v673_v8 }
  0x49   :  { %630 = vmatmul.mubr.msk.bf16.vlgmr.msra.gmra.mrb[0].mxu0 %vm123_vm0, %v674_v9  ;;  %636 = vmatmul.mubr.msk.bf16.vlgmr.msra.gmra.mrb[0].mxu1 %vm123_vm0, %v675_v10 }
  0x4a   :  { %175 = vmatprep.mubr.bf16.mxu0 %v831_v0  ;;  %263 = vmatprep.mubr.bf16.mxu1 %v831_v0 }
  0x51   :  { %631 = vmatmul.mubr.msk.bf16.gmra.mrb[4].mxu0 %vm123_vm0, %v676_v11  ;;  %637 = vmatmul.mubr.msk.bf16.gmra.mrb[4].mxu1 %vm123_vm0, %v677_v12 }
  0x52   :  { %185 = vmatprep.mubr.bf16.mxu0 %v831_v0  ;;  %273 = vmatprep.mubr.bf16.mxu1 %v831_v0 }
  0x59   :  { %632 = vmatmul.mubr.msk.bf16.gmra.mrb[8].mxu0 %vm123_vm0, %v678_v13  ;;  %638 = vmatmul.mubr.msk.bf16.gmra.mrb[8].mxu1 %vm123_vm0, %v679_v14 }
 0x11c   :  { %v167_v18 = vpop.f32.mrb[0].mxu0  ;;  %v255_v19 = vpop.f32.mrb[0].mxu1 }
 0x11d   :  { %v318_v20 = vmul.f32 %v167_v18, %v167_v18  ;;  %v338_v21 = vmul.f32 %v255_v19, %v255_v19  ;;  %v433_v22 = vsub.f32 %v255_v19, %v167_v18  ;;  %v169_v23 = vpop.f32.mrb[1].mxu0  ;;  %v257_v24 = vpop.f32.mrb[1].mxu1 }
 0x11e   :  { %v323_v25 = vmul.f32 %v169_v23, %v169_v23  ;;  %v343_v26 = vmul.f32 %v257_v24, %v257_v24  ;;  %v438_v27 = vsub.f32 %v257_v24, %v169_v23  ;;  %v171_v28 = vpop.f32.mrb[2].mxu0  ;;  %v259_v29 = vpop.f32.mrb[2].mxu1 }
 0x11f   :  { %v443_v31 = vmul.f32 %v433_v22, %v433_v22  ;;  %v319_v32 = vmul.f32 %v171_v28, %v171_v28  ;;  %v339_v33 = vmul.f32 %v259_v29, %v259_v29  ;;  %v434_v34 = vsub.f32 %v259_v29, %v171_v28  ;;  %v173_v35 = vpop.f32.mrb[3].mxu0  ;;  %v261_v36 = vpop.f32.mrb[3].mxu1 }
 0x120   :  { %v328_v37 = vadd.f32 %v323_v25, %v318_v20  ;;  %v348_v38 = vadd.f32 %v343_v26, %v338_v21  ;;  %v448_v39 = vmul.f32 %v438_v27, %v438_v27  ;;  %v324_v40 = vmul.f32 %v173_v35, %v173_v35 }
 0x121   :  { %v444_v41 = vmul.f32 %v434_v34, %v434_v34  ;;  %v344_v42 = vmul.f32 %v261_v36, %v261_v36  ;;  %v439_v43 = vsub.f32 %v261_v36, %v173_v35 }
 0x122   :  { %v453_v44 = vadd.f32 %v448_v39, %v443_v31  ;;  %v329_v45 = vadd.f32 %v324_v40, %v319_v32  ;;  %v905_v46 = vmax.f32 %v328_v37, 1e-07  ;;  %v912_v51 = vmax.f32 %v348_v38, 1e-07 }
 0x123   :  { %v349_v47 = vadd.f32 %v344_v42, %v339_v33  ;;  %v449_v48 = vmul.f32 %v439_v43, %v439_v43 }
 0x124   :  { %v458_v52 = vmax.f32 %v453_v44, 1e-07  ;;  %v177_v53 = vpop.f32.mrb[4].mxu0  ;;  %v265_v54 = vpop.f32.mrb[4].mxu1  ;;  %v915_v55 = vmax.f32 %v329_v45, 1e-07  ;;  %v519_v28 = vmul.f32 %v910_v50, %v912_v51 }
 0x125   :  { %v454_v56 = vadd.f32 %v449_v48, %v444_v41  ;;  %v320_v57 = vmul.f32 %v177_v53, %v177_v53  ;;  %v340_v58 = vmul.f32 %v265_v54, %v265_v54  ;;  %v179_v59 = vpop.f32.mrb[5].mxu0  ;;  %v267_v60 = vpop.f32.mrb[5].mxu1  ;;  %v435_v61 = vsub.f32 %v265_v54, %v177_v53 }
 0x126   :  { %680 = vlog2.f32 %v458_v52  ;;  %v325_v62 = vmul.f32 %v179_v59, %v179_v59  ;;  %v345_v63 = vmul.f32 %v267_v60, %v267_v60  ;;  %v181_v0 = vpop.f32.mrb[6].mxu0  ;;  %v269_v1 = vpop.f32.mrb[6].mxu1  ;;  %v917_v2 = vmax.f32 %v349_v47, 1e-07 }
 0x127   :  { %v459_v3 = vmax.f32 %v454_v56, 1e-07  ;;  %v440_v4 = vsub.f32 %v267_v60, %v179_v59  ;;  %v321_v5 = vmul.f32 %v181_v0, %v181_v0  ;;  %v183_v6 = vpop.f32.mrb[7].mxu0  ;;  %v271_v7 = vpop.f32.mrb[7].mxu1  ;;  %v445_v8 = vmul.f32 %v435_v61, %v435_v61 }
 0x128   :  { %v919_v9 = vadd.f32 %v325_v62, %v320_v57  ;;  %v350_v10 = vadd.f32 %v345_v63, %v340_v58  ;;  %v341_v11 = vmul.f32 %v269_v1, %v269_v1  ;;  %v436_v13 = vsub.f32 %v269_v1, %v181_v0 }
 0x129   :  { %682 = vlog2.f32 %v459_v3  ;;  %v450_v12 = vmul.f32 %v440_v4, %v440_v4  ;;  %v326_v14 = vmul.f32 %v183_v6, %v183_v6  ;;  %v346_v18 = vmul.f32 %v271_v7, %v271_v7 }
 0x12a   :  { %684 = vrsqrt.f32 %v905_v46  ;;  %v922_v15 = vmax.f32 %v350_v10, 1e-07  ;;  %v441_v19 = vsub.f32 %v271_v7, %v183_v6  ;;  %v446_v21 = vmul.f32 %v436_v13, %v436_v13 }
 0x12b   :  { %v455_v20 = vadd.f32 %v450_v12, %v445_v8  ;;  %v331_v22 = vadd.f32 %v326_v14, %v321_v5  ;;  %v520_v23 = vmul.f32 %v910_v50, %v917_v2  ;;  %686 = vrsqrt.f32 %v915_v55 }
 0x12c   :  { %v351_v24 = vadd.f32 %v346_v18, %v341_v11  ;;  %v451_v25 = vmul.f32 %v441_v19, %v441_v19  ;;  %v187_v26 = vpop.f32.mrb[8].mxu0  ;;  %v275_v27 = vpop.f32.mrb[8].mxu1  ;;  %v521_v35 = vmul.f32 %v910_v50, %v922_v15  ;;  %v940_v61 = vsel %vm307_vm3, 1.0, %v832_v49 }
 0x12d   :  { %v460_v29 = vmax.f32 %v455_v20, 1e-07  ;;  %v322_v31 = vmul.f32 %v187_v26, %v187_v26  ;;  %v342_v32 = vmul.f32 %v275_v27, %v275_v27  ;;  %v189_v33 = vpop.f32.mrb[9].mxu0  ;;  %v277_v34 = vpop.f32.mrb[9].mxu1  ;;  %v437_v38 = vsub.f32 %v275_v27, %v187_v26 }
 0x12e   :  { %v931_v36 = vmax.f32 %v351_v24, 1e-07  ;;  %v456_v37 = vadd.f32 %v451_v25, %v446_v21  ;;  %v327_v39 = vmul.f32 %v189_v33, %v189_v33  ;;  %v191_v40 = vpop.f32.mrb[10].mxu0  ;;  %v279_v41 = vpop.f32.mrb[10].mxu1  ;;  %v347_v42 = vmul.f32 %v277_v34, %v277_v34 }
 0x12f   :  { %688 = vlog2.f32 %v460_v29  ;;  %v442_v43 = vsub.f32 %v277_v34, %v189_v33  ;;  %v192_v44 = vpop.f32.mrb[11].mxu0  ;;  %v280_v45 = vpop.f32.mrb[11].mxu1  ;;  %v524_v47 = vadd.f32 %v520_v23, %v519_v28  ;;  %v447_v53 = vmul.f32 %v437_v38, %v437_v38 }
 0x130   :  { %v681_v48 = vpop.eup %680  ;;  %v461_v52 = vmax.f32 %v456_v37, 1e-07  ;;  %v332_v54 = vadd.f32 %v327_v39, %v322_v31  ;;  %v522_v56 = vmul.f32 %v910_v50, %v931_v36  ;;  %v352_v58 = vadd.f32 %v347_v42, %v342_v32 }
 0x131   :  { %v464_v57 = vmul.f32 0.6931472, %v681_v48  ;;  %v452_v59 = vmul.f32 %v442_v43, %v442_v43  ;;  %v525_v60 = vadd.f32 %v524_v47, %v521_v35  ;;  %v951_v7 = vmax.f32 %v919_v9, 1e-07 }
 0x132   :  { %690 = vlog2.f32 %v461_v52  ;;  %v942_v62 = vmax.f32 %v352_v58, 1e-07  ;;  %v953_v10 = vmax.f32 %v331_v22, 1e-07  ;;  %v958_v14 = vmax.f32 %v332_v54, 1e-07 }
 0x133   :  { %v683_v16 = vpop.eup %682  ;;  %v457_v30 = vadd.f32 %v452_v59, %v447_v53  ;;  %v526_v63 = vadd.f32 %v525_v60, %v522_v56  ;;  %692 = vlog2.f32 %v912_v51  ;;  %v473_v1 = vmul.f32 0.5, %v464_v57 }
 0x134   :  { %v685_v0 = vpop.eup %684  ;;  %v466_v3 = vmul.f32 0.6931472, %v683_v16  ;;  %694 = vlog2.f32 %v917_v2  ;;  %v523_v5 = vmul.f32 %v940_v61, %v942_v62  ;;  %vm360_vm4 = vcmp.eq.f32.partialorder %v905_v46, inf }
 0x135   :  { %v462_v4 = vmax.f32 %v457_v30, 1e-07  ;;  %696 = vlog2.f32 %v922_v15  ;;  %v687_v49 = vpop.eup %686  ;;  %v478_v11 = vmul.f32 %v910_v50, %v473_v1  ;;  %v359_v18 = vmul.f32 %v685_v0, %v905_v46 }
 0x136   :  { %v474_v6 = vmul.f32 0.5, %v466_v3  ;;  %698 = vlog2.f32 %v931_v36  ;;  %v527_v8 = vadd.f32 %v526_v63, %v523_v5  ;;  %v366_v20 = vmul.f32 %v687_v49, %v915_v55 }
 0x137   :  { %700 = vlog2.f32 %v462_v4  ;;  %v361_v25 = vsel %vm360_vm4, %v905_v46, %v359_v18  ;;  %vm367_vm5 = vcmp.eq.f32.partialorder %v915_v55, inf  ;;  %vm362_vm6 = vcmp.eq.f32.partialorder %v905_v46, 0.0 }
 0x138   :  { %v479_v12 = vmul.f32 %v910_v50, %v474_v6  ;;  %702 = vlog2.f32 %v942_v62  ;;  %528 = vadd.xlane.f32.xlu1 %v527_v8  ;;  %v368_v28 = vsel %vm367_vm5, %v915_v55, %v366_v20  ;;  %v363_v32 = vand.u32 2147483648, %v905_v46 }
 0x139   :  { %v689_v13 = vpop.eup %688  ;;  %704 = vlog2.f32 %v905_v46  ;;  %v370_v33 = vand.u32 2147483648, %v915_v55  ;;  %vm369_vm7 = vcmp.eq.f32.partialorder %v915_v55, 0.0  ;;  %vm374_vm8 = vcmp.eq.f32.partialorder %v951_v7, inf }
 0x13a   :  { %v468_v9 = vmul.f32 0.6931472, %v689_v13  ;;  %v483_v19 = vadd.f32 %v479_v12, %v478_v11  ;;  %706 = vlog2.f32 %v915_v55  ;;  %v980_v40 = vsel %vm362_vm6, %v363_v32, %v361_v25 }
 0x13b   :  { %708 = vlog2.f32 %v951_v7  ;;  %v982_v41 = vsel %vm369_vm7, %v370_v33, %v368_v28  ;;  %v377_v43 = vand.u32 2147483648, %v951_v7  ;;  %v384_v44 = vand.u32 2147483648, %v953_v10 }
 0x13c   :  { %v691_v21 = vpop.eup %690  ;;  %v475_v22 = vmul.f32 0.5, %v468_v9  ;;  %710 = vlog2.f32 %v953_v10  ;;  %v391_v48 = vand.u32 2147483648, %v958_v14  ;;  %vm381_vm9 = vcmp.eq.f32.partialorder %v953_v10, inf }
 0x13d   :  { %v693_v23 = vpop.eup %692  ;;  %v470_v24 = vmul.f32 0.6931472, %v691_v21  ;;  %712 = vlog2.f32 %v958_v14  ;;  %vm388_vm10 = vcmp.eq.f32.partialorder %v958_v14, inf  ;;  %v398_v57 = vand.u32 2147483648, %v912_v51 }
 0x13e   :  { %v695_v26 = vpop.eup %694  ;;  %v480_v27 = vmul.f32 %v910_v50, %v475_v22  ;;  %714 = vrsqrt.f32 %v951_v7  ;;  %v538_v37 = vmul.f32 0.6931472, %v693_v23  ;;  %vm376_vm11 = vcmp.eq.f32.partialorder %v951_v7, 0.0 }
 0x13f   :  { %v697_v29 = vpop.eup %696  ;;  %v476_v31 = vmul.f32 0.5, %v470_v24  ;;  %716 = vrsqrt.f32 %v953_v10  ;;  %v540_v47 = vmul.f32 0.6931472, %v695_v26  ;;  %vm383_vm12 = vcmp.eq.f32.partialorder %v953_v10, 0.0 }
 0x140   :  { %v699_v34 = vpop.eup %698  ;;  %v484_v35 = vadd.f32 %v483_v19, %v480_v27  ;;  %718 = vrsqrt.f32 %v958_v14  ;;  %v542_v54 = vmul.f32 0.6931472, %v697_v29  ;;  %v405_v16 = vand.u32 2147483648, %v917_v2 }
 0x141   :  { %v701_v38 = vpop.eup %700  ;;  %v481_v39 = vmul.f32 %v910_v50, %v476_v31  ;;  %720 = vrsqrt.f32 %v912_v51  ;;  %v544_v59 = vmul.f32 0.6931472, %v699_v34  ;;  %vm390_vm13 = vcmp.eq.f32.partialorder %v958_v14, 0.0 }
 0x142   :  { %v703_v46 = vpop.eup %702  ;;  %v472_v42 = vmul.f32 0.6931472, %v701_v38  ;;  %722 = vrsqrt.f32 %v917_v2  ;;  %v412_v6 = vand.u32 2147483648, %v922_v15  ;;  %vm395_vm14 = vcmp.eq.f32.partialorder %v912_v51, inf }
 0x143   :  { %v705_v55 = vpop.eup %704  ;;  %v485_v45 = vadd.f32 %v484_v35, %v481_v39  ;;  %724 = vrsqrt.f32 %v922_v15  ;;  %v546_v0 = vmul.f32 0.6931472, %v703_v46  ;;  %vm402_vm15 = vcmp.eq.f32.partialorder %v917_v2, inf }
 0x144   :  { %v707_v52 = vpop.eup %706  ;;  %v477_v53 = vmul.f32 0.5, %v472_v42  ;;  %v548_v56 = vmul.f32 0.6931472, %v705_v55  ;;  %726 = vrsqrt.f32 %v931_v36  ;;  %vm397_vm0 = vcmp.eq.f32.partialorder %v912_v51, 0.0 }
 0x145   :  { %v709_v58 = vpop.eup %708  ;;  %v550_v60 = vmul.f32 0.6931472, %v707_v52  ;;  %728 = vrsqrt.f32 %v942_v62  ;;  %vm404_vm1 = vcmp.eq.f32.partialorder %v917_v2, 0.0  ;;  %vm409_vm2 = vcmp.eq.f32.partialorder %v922_v15, inf }
 0x146   :  { %v711_v30 = vpop.eup %710  ;;  %v482_v63 = vmul.f32 %v940_v61, %v477_v53  ;;  %v552_v1 = vmul.f32 0.6931472, %v709_v58  ;;  %v557_v3 = vsub.f32 %v538_v37, %v548_v56  ;;  %vm416_vm3 = vcmp.eq.f32.partialorder %v931_v36, inf }
 0x147   :  { %v713_v4 = vpop.eup %712  ;;  %v554_v5 = vmul.f32 0.6931472, %v711_v30  ;;  %v558_v49 = vsub.f32 %v540_v47, %v550_v60  ;;  %v419_v22 = vand.u32 2147483648, %v931_v36  ;;  %vm411_vm4 = vcmp.eq.f32.partialorder %v922_v15, 0.0 }
 0x148   :  { %v715_v8 = vpop.eup %714  ;;  %v486_v11 = vadd.f32 %v485_v45, %v482_v63  ;;  %v556_v12 = vmul.f32 0.6931472, %v713_v4  ;;  %v559_v13 = vsub.f32 %v542_v54, %v552_v1  ;;  %v562_v18 = vand.u32 2147483647, %v557_v3 }
 0x149   :  { %v717_v9 = vpop.eup %716  ;;  %v560_v19 = vsub.f32 %v544_v59, %v554_v5  ;;  %v563_v20 = vand.u32 2147483647, %v558_v49  ;;  %v373_v21 = vmul.f32 %v715_v8, %v951_v7  ;;  %vm418_vm5 = vcmp.eq.f32.partialorder %v931_v36, 0.0 }
 0x14a   :  { %v719_v23 = vpop.eup %718  ;;  %487 = vadd.xlane.f32.xlu0 %v486_v11  ;;  %v561_v24 = vsub.f32 %v546_v0, %v556_v12  ;;  %v564_v25 = vand.u32 2147483647, %v559_v13  ;;  %v567_v26 = vmul.f32 0.5, %v562_v18  ;;  %v380_v27 = vmul.f32 %v717_v9, %v953_v10 }
 0x14b   :  { %v721_v28 = vpop.eup %720  ;;  %v565_v29 = vand.u32 2147483647, %v560_v19  ;;  %v568_v31 = vmul.f32 0.5, %v563_v20  ;;  %v375_v32 = vsel %vm374_vm8, %v951_v7, %v373_v21  ;;  %v387_v33 = vmul.f32 %v719_v23, %v958_v14 }
 0x14c   :  { %v723_v34 = vpop.eup %722  ;;  %v566_v35 = vand.u32 2147483647, %v561_v24  ;;  %v569_v37 = vmul.f32 0.5, %v564_v25  ;;  %v572_v38 = vmul.f32 %v910_v50, %v567_v26  ;;  %vm423_vm6 = vcmp.eq.f32.partialorder %v942_v62, inf }
 0x14d   :  { %v725_v39 = vpop.eup %724  ;;  %v570_v46 = vmul.f32 0.5, %v565_v29  ;;  %v573_v42 = vmul.f32 %v910_v50, %v568_v31  ;;  %v382_v55 = vsel %vm381_vm9, %v953_v10, %v380_v27  ;;  %v389_v45 = vsel %vm388_vm10, %v958_v14, %v387_v33 }
 0x14e   :  { %v571_v47 = vmul.f32 0.5, %v566_v35  ;;  %v574_v52 = vmul.f32 %v910_v50, %v569_v37  ;;  %v378_v53 = vsel %vm376_vm11, %v377_v43, %v375_v32  ;;  %v385_v54 = vsel %vm383_vm12, %v384_v44, %v382_v55  ;;  %v727_v56 = vpop.eup %726 }
 0x14f   :  { %v575_v58 = vmul.f32 %v910_v50, %v570_v46  ;;  %v577_v59 = vadd.f32 %v573_v42, %v572_v38  ;;  %v394_v60 = vmul.f32 %v721_v28, %v912_v51  ;;  %v401_v30 = vmul.f32 %v723_v34, %v917_v2  ;;  %v729_v44 = vpop.eup %728 }
 0x150   :  { %v576_v63 = vmul.f32 %v940_v61, %v571_v47  ;;  %v392_v7 = vsel %vm390_vm13, %v391_v48, %v389_v45  ;;  %v408_v43 = vmul.f32 %v725_v39, %v922_v15  ;;  %v415_v10 = vmul.f32 %v727_v56, %v931_v36 }
 0x151   :  { %v578_v0 = vadd.f32 %v577_v59, %v574_v52  ;;  %v396_v1 = vsel %vm395_vm14, %v912_v51, %v394_v60  ;;  %v403_v3 = vsel %vm402_vm15, %v917_v2, %v401_v30  ;;  %v426_v4 = vand.u32 2147483648, %v942_v62 }
 0x152   :  { %v399_v14 = vsel %vm397_vm0, %v398_v57, %v396_v1  ;;  %v406_v48 = vsel %vm404_vm1, %v405_v16, %v403_v3  ;;  %v410_v5 = vsel %vm409_vm2, %v922_v15, %v408_v43  ;;  %v417_v49 = vsel %vm416_vm3, %v931_v36, %v415_v10 }
 0x153   :  { %v579_v8 = vadd.f32 %v578_v0, %v575_v58  ;;  %v413_v51 = vsel %vm411_vm4, %v412_v6, %v410_v5  ;;  %v420_v57 = vsel %vm418_vm5, %v419_v22, %v417_v49  ;;  %v422_v2 = vmul.f32 %v729_v44, %v942_v62 }
 0x154   :  { %v428_v16 = vsub.f32 %v399_v14, %v980_v40  ;;  %v429_v11 = vsub.f32 %v406_v48, %v982_v41  ;;  %v430_v12 = vsub.f32 %v413_v51, %v378_v53  ;;  %v431_v13 = vsub.f32 %v420_v57, %v385_v54 }
 0x155   :  { %v580_v18 = vadd.f32 %v579_v8, %v576_v63  ;;  %v424_v9 = vsel %vm423_vm6, %v942_v62, %v422_v2  ;;  %vm425_vm7 = vcmp.eq.f32.partialorder %v942_v62, 0.0  ;;  %vm590_vm8 = vcmp.eq.s32.totalorder %v899_v17, 0 }
 0x156   :  { %v427_v15 = vsel %vm425_vm7, %v426_v4, %v424_v9  ;;  %v496_v6 = vmul.f32 %v428_v16, %v428_v16  ;;  %v497_v19 = vmul.f32 %v429_v11, %v429_v11  ;;  %v498_v36 = vmul.f32 %v430_v12, %v430_v12 }
 0x157   :  { %581 = vadd.xlane.f32.xlu1 %v580_v18  ;;  %v432_v20 = vsub.f32 %v427_v15, %v392_v7  ;;  %v499_v21 = vmul.f32 %v431_v13, %v431_v13  ;;  %vm593_vm9 = vcmp.eq.s32.totalorder %v899_v17, 1  ;;  %vm596_vm10 = vcmp.eq.s32.totalorder %v899_v17, 2 }
 0x158   :  { %v501_v40 = vmul.f32 %v910_v50, %v496_v6  ;;  %v502_v41 = vmul.f32 %v910_v50, %v497_v19  ;;  %v503_v22 = vmul.f32 %v910_v50, %v498_v36  ;;  %vm599_vm11 = vcmp.eq.s32.totalorder %v899_v17, 3 }
 0x159   :  { %v500_v23 = vmul.f32 %v432_v20, %v432_v20  ;;  %v504_v24 = vmul.f32 %v910_v50, %v499_v21 }
 0x15a   :  { %v506_v25 = vadd.f32 %v502_v41, %v501_v40 }
 0x15b   :  { %v505_v26 = vmul.f32 %v940_v61, %v500_v23 }
 0x15c   :  { %v507_v62 = vadd.f32 %v506_v25, %v503_v22 }
 0x15e   :  { %v508_v27 = vadd.f32 %v507_v62, %v504_v24 }
 0x160   :  { %v509_v28 = vadd.f32 %v508_v27, %v505_v26 }
 0x162   :  { %510 = vadd.xlane.f32.xlu0 %v509_v28 }
 0x1c5   :  { %v529_v37 = vpop.xlane.xlu1 %528 }
 0x1c6   :  { %v530_v46 = vrot.slane %v529_v37, 4 }
 0x1c8   :  { %v531_v50 = vadd.f32 %v530_v46, %v529_v37 }
 0x1ca   :  { %v532_v45 = vrot.slane %v531_v50, 2 }
 0x1cc   :  { %v533_v54 = vadd.f32 %v532_v45, %v531_v50 }
 0x1ce   :  { %v534_v60 = vrot.slane %v533_v54, 1 }
 0x1d0   :  { %v535_v43 = vadd.f32 %v534_v60, %v533_v54 }
 0x1d7   :  { %v488_v29 = vpop.xlane.xlu0 %487 }
 0x1d8   :  { %v489_v31 = vrot.slane %v488_v29, 4 }
 0x1da   :  { %v490_v32 = vadd.f32 %v489_v31, %v488_v29 }
 0x1dc   :  { %v491_v33 = vrot.slane %v490_v32, 2 }
 0x1de   :  { %v492_v34 = vadd.f32 %v491_v33, %v490_v32 }
 0x1e0   :  { %v493_v35 = vrot.slane %v492_v34, 1 }
 0x1e2   :  { %v494_v38 = vadd.f32 %v493_v35, %v492_v34 }
 0x1e4   :  { %644 = vpush %v494_v38  ;;  %v582_v39 = vpop.xlane.xlu1 %581 }
 0x1e5   :  { %v583_v42 = vrot.slane %v582_v39, 4 }
 0x1e7   :  { %v584_v55 = vadd.f32 %v583_v42, %v582_v39 }
 0x1e9   :  { %v585_v47 = vrot.slane %v584_v55, 2 }
 0x1eb   :  { %v586_v56 = vadd.f32 %v585_v47, %v584_v55 }
 0x1ed   :  { %v587_v63 = vrot.slane %v586_v56, 1 }
 0x1ef   :  { %v511_v61 = vpop.xlane.xlu0 %510  ;;  %v588_v10 = vadd.f32 %v587_v63, %v586_v56 }
 0x1f0   :  { %v512_v52 = vrot.slane %v511_v61, 4 }
 0x1f2   :  { %v513_v53 = vadd.f32 %v512_v52, %v511_v61 }
 0x1f4   :  { %v514_v58 = vrot.slane %v513_v53, 2 }
 0x1f6   :  { %v515_v59 = vadd.f32 %v514_v58, %v513_v53 }
 0x1f8   :  { %v516_v30 = vrot.slane %v515_v59, 1 }
 0x1fa   :  { %v517_v7 = vadd.f32 %v516_v30, %v515_v59 }
 0x1fc   :  { %646 = vpush %v517_v7 }
 0x1fd   :  { %648 = vpush %v535_v43 }
 0x1fe   :  { %650 = vpush %v588_v10 }
 0x215   :  { %s645_s2 = spop %644 }
 0x216   :  { %v591_v44 = vstv %s645_s2 }
 0x217   :  { %v592_v0 = vsel %vm590_vm8, %v591_v44, 0.0 }
 0x22d   :  { %s647_s23 = spop %646 }
 0x22e   :  { %v594_v1 = vstv %s647_s23  ;;  %s649_s26 = spop %648 }
 0x22f   :  { %v595_v3 = vsel %vm593_vm9, %v594_v1, %v592_v0  ;;  %v597_v4 = vstv %s649_s26  ;;  %s651_s27 = spop %650 }
 0x230   :  { %v598_v14 = vsel %vm596_vm10, %v597_v4, %v595_v3  ;;  %v600_v48 = vstv %s651_s27 }
 0x231   :  { %v601_v5 = vsel %vm599_vm11, %v600_v48, %v598_v14 }
 0x232   :  { %602 = vst [vmem:[#allocation8] sm:$0xff] %v601_v5 }
 0x233   :  { %807 = shalt.err (!%p804_p0)
}
 0x234   :  { %s808_s4 = scalar_lea.hbm %s1103_s3, 128 }
 0x235   :  { %p809_p1 = scmp.ne.s32.totalorder %s1103_s3, %s808_s4  ;;  %p812_p2 = scmp.lt.u32.totalorder %s808_s4, %s1103_s3 }
 0x237   :  { %p814_p3 = pnand %p812_p2, %p809_p1 }
 0x239   :  { %817 = shalt.err (!%p814_p3)
}
 0x23a   :  { %612 = dma.vmem_to_hbm [thread:$0]  %s610_s25, 128, %s1103_s3, [#allocation4]  }
 0x23b   :  { %822 = dma.done.wait [#allocation4], 128  }
 0x23c   :  { %823 = vsyncadd [#allocation4], 4294967168 }
 0x23d   :  { %616 = vsyncpa [#allocation3], 1 }
 0x23e   :  { %617 = vsyncpa [#allocation6], 1 }
 0x23f   :  { %618 = vsyncpa [#allocation4], 1 }

</bundles_post_ra>
